<compile_context>
chip_gen: v5e
topology: v5e:2x2
jax: 0.10.0
libtpu: 0.0.40
codegen_flags: <defaults>
</compile_context>

<pallas_src>
import jax
import jax.numpy as jnp
from jax.experimental import pallas as pl
from jax.experimental.pallas import tpu as pltpu

IN_FEATURES = 48 * 4 * 4   # 768
HIDDEN = 100
OUT = 2
HIDDEN_PAD = 128           # lane-aligned hidden width (zero-padded)
OUT_PAD = 8                # small padded output width (only first OUT columns are meaningful)


def _round_up(n, m):
    return ((n + m - 1) // m) * m


def _discriminator_kernel(x_ref, w1_ref, b1_ref, w2_ref, b2_ref, o_ref):
    # fc1: cast x to bf16 in-VMEM (cheap VPU op) and run the bf16 MXU dot with f32 accumulation.
    x = x_ref[...].astype(jnp.bfloat16)
    h = jnp.dot(x, w1_ref[...], preferred_element_type=jnp.float32)
    h = jnp.maximum(h + b1_ref[...], 0.0)                                   # (TM, 128) f32

    # fc2: w2 zero-padded to (128, 8); padded columns have zero weight + zero bias and are masked
    # out of the softmax below. Kept f32 (tiny vs fc1) to keep the logit difference precise.
    logits = jnp.dot(h, w2_ref[...], preferred_element_type=jnp.float32) + b2_ref[...]  # (TM, 8)

    # Numerically stable log_softmax over the first OUT columns only (8-lane masked).
    col = jax.lax.broadcasted_iota(jnp.int32, logits.shape, 1)
    valid = col < OUT
    m = jnp.max(jnp.where(valid, logits, -jnp.inf), axis=1, keepdims=True)
    shifted = logits - m
    lse = jnp.log(jnp.sum(jnp.where(valid, jnp.exp(shifted), 0.0), axis=1, keepdims=True))

    # (TM, 8) store; wrapper slices [:, :OUT]. Lanes >= OUT hold garbage and are never used.
    o_ref[...] = shifted - lse


def prepare_params(w1, b1, w2, b2):
    """One-time padding/casting of the static parameters (hoisted out of the forward pass)."""
    w1p = jnp.zeros((IN_FEATURES, HIDDEN_PAD), jnp.bfloat16).at[:, :HIDDEN].set(
        w1.astype(jnp.bfloat16))
    b1p = jnp.zeros((1, HIDDEN_PAD), jnp.float32).at[:, :HIDDEN].set(b1.astype(jnp.float32))
    w2p = jnp.zeros((HIDDEN_PAD, OUT_PAD), jnp.float32).at[:HIDDEN, :OUT].set(
        w2.astype(jnp.float32))
    b2p = jnp.zeros((1, OUT_PAD), jnp.float32).at[:, :OUT].set(b2.astype(jnp.float32))
    return w1p, b1p, w2p, b2p


def discriminator_forward(x, constant, params, *, tm=2048):
    """Forward pass of Discriminator.

    x:      (B, 768), f32 or bf16 (cast to bf16 inside the kernel for the fc1 MXU dot)
    params: output of prepare_params(w1, b1, w2, b2)
    Returns (B, 2) float32 log-probabilities. `constant` (GRL scale) is unused in forward.
    """
    del constant  # GradReverse forward is identity; constant only affects backward.
    w1p, b1p, w2p, b2p = params
    B = x.shape[0]

    # Batch tile: as large as requested, but capped so the grid has >=2 tiles when B allows it
    # (keeps both TensorCores busy on v7x). Always a multiple of 8.
    cap = _round_up(max(-(-B // 2), 1), 8)
    TM = min(_round_up(tm, 8), cap)
    grid = (pl.cdiv(B, TM),)   # ragged last block handled by Pallas; no wrapper pad of x.

    itemsize = jnp.dtype(x.dtype).itemsize
    cost = pl.CostEstimate(
        flops=2 * B * IN_FEATURES * HIDDEN_PAD + 2 * B * HIDDEN_PAD * OUT_PAD,
        transcendentals=B * OUT_PAD,
        bytes_accessed=(B * IN_FEATURES * itemsize          # streamed x
                        + B * OUT_PAD * 4                   # output writeback
                        + IN_FEATURES * HIDDEN_PAD * 2      # resident w1 (bf16)
                        + HIDDEN_PAD * OUT_PAD * 4),        # resident w2
    )

    out = pl.pallas_call(
        _discriminator_kernel,
        out_shape=jax.ShapeDtypeStruct((B, OUT_PAD), jnp.float32),
        grid=grid,
        in_specs=[
            pl.BlockSpec((TM, IN_FEATURES), lambda i: (i, 0)),          # x tile streams per step
            pl.BlockSpec((IN_FEATURES, HIDDEN_PAD), lambda i: (0, 0)),  # w1: VMEM-resident
            pl.BlockSpec((1, HIDDEN_PAD), lambda i: (0, 0)),            # b1: resident
            pl.BlockSpec((HIDDEN_PAD, OUT_PAD), lambda i: (0, 0)),      # w2: resident
            pl.BlockSpec((1, OUT_PAD), lambda i: (0, 0)),               # b2: resident
        ],
        out_specs=pl.BlockSpec((TM, OUT_PAD), lambda i: (i, 0)),
        compiler_params=pltpu.CompilerParams(
            dimension_semantics=("parallel",),   # batch tiles are independent (v7x megacore)
        ),
        cost_estimate=cost,
    )(x, w1p, b1p, w2p, b2p)

    return out[:, :OUT]


def init_params(key):
    """Deterministic init mimicking PyTorch nn.Linear (uniform +/- 1/sqrt(fan_in))."""
    k1, k2, k3, k4 = jax.random.split(key, 4)
    bound1 = 1.0 / jnp.sqrt(jnp.float32(IN_FEATURES))
    bound2 = 1.0 / jnp.sqrt(jnp.float32(HIDDEN))
    w1 = jax.random.uniform(k1, (IN_FEATURES, HIDDEN), jnp.float32, -bound1, bound1)
    b1 = jax.random.uniform(k2, (1, HIDDEN), jnp.float32, -bound1, bound1)
    w2 = jax.random.uniform(k3, (HIDDEN, OUT), jnp.float32, -bound2, bound2)
    b2 = jax.random.uniform(k4, (1, OUT), jnp.float32, -bound2, bound2)
    return w1, b1, w2, b2


def _reference(x, w1, b1, w2, b2):
    h = jnp.maximum(x @ w1 + b1, 0.0)
    return jax.nn.log_softmax(h @ w2 + b2, axis=1)


if __name__ == "__main__":
    key = jax.random.PRNGKey(0)
    k_params, k_x1, k_x2 = jax.random.split(key, 3)
    w1, b1, w2, b2 = init_params(k_params)
    params = prepare_params(w1, b1, w2, b2)   # pay the padding/cast cost once
    constant = 1.0

    # Small batch (B=2 -> single partial 8-row tile).
    B1 = 2
    x1 = jax.random.normal(k_x1, (B1, IN_FEATURES), jnp.float32)
    out1 = jax.block_until_ready(discriminator_forward(x1, constant, params))
    ref1 = _reference(x1, w1, b1, w2, b2)
    assert out1.shape == (B1, OUT)
    # bf16 fc1 limits accuracy to ~1e-2 absolute — expected for this discriminator head.
    assert jnp.allclose(out1, ref1, atol=2e-2, rtol=2e-2), float(jnp.max(jnp.abs(out1 - ref1)))

    # Non-multiple batch with a small forced tile: grid of 3 with a ragged last block.
    B2 = 40
    x2 = jax.random.normal(k_x2, (B2, IN_FEATURES), jnp.float32)
    out2 = jax.block_until_ready(discriminator_forward(x2, constant, params, tm=16))
    ref2 = _reference(x2, w1, b1, w2, b2)
    assert out2.shape == (B2, OUT)
    assert jnp.allclose(out2, ref2, atol=2e-2, rtol=2e-2), float(jnp.max(jnp.abs(out2 - ref2)))

    print("KERNEL_OK")
</pallas_src>

<mosaic_0001>
module attributes {stable_mosaic.version = 11 : i64} {
  func.func @_discriminator_kernel(%arg0: i32, %arg1: memref<8x768xf32, #tpu.memory_space<vmem>>, %arg2: memref<768x128xbf16, #tpu.memory_space<vmem>>, %arg3: memref<1x128xf32, #tpu.memory_space<vmem>>, %arg4: memref<128x8xf32, #tpu.memory_space<vmem>>, %arg5: memref<1x8xf32, #tpu.memory_space<vmem>>, %arg6: memref<8x8xf32, #tpu.memory_space<vmem>>) attributes {dimension_semantics = [#tpu.dimension_semantics<parallel>], iteration_bounds = array<i64: 1>, scalar_prefetch = 0 : i64, scratch_operands = 0 : i64, tpu.core_type = #tpu.core_type<tc>, window_params = [{transform_indices = @transform_0, window_bounds = array<i64: 8, 768>}, {pipeline_mode = #tpu.pipeline_mode<synchronous>, transform_indices = @transform_1, window_bounds = array<i64: 768, 128>}, {pipeline_mode = #tpu.pipeline_mode<synchronous>, transform_indices = @transform_2, window_bounds = array<i64: 1, 128>}, {pipeline_mode = #tpu.pipeline_mode<synchronous>, transform_indices = @transform_3, window_bounds = array<i64: 128, 8>}, {pipeline_mode = #tpu.pipeline_mode<synchronous>, transform_indices = @transform_4, window_bounds = array<i64: 1, 8>}, {transform_indices = @transform_5, window_bounds = array<i64: 8, 8>}]} {
    %c0 = arith.constant 0 : index
    %c0_0 = arith.constant 0 : index
    %0 = vector.load %arg1[%c0, %c0_0] : memref<8x768xf32, #tpu.memory_space<vmem>>, vector<8x768xf32>
    %1 = arith.truncf %0 : vector<8x768xf32> to vector<8x768xbf16>
    %c0_1 = arith.constant 0 : index
    %c0_2 = arith.constant 0 : index
    %2 = vector.load %arg2[%c0_1, %c0_2] : memref<768x128xbf16, #tpu.memory_space<vmem>>, vector<768x128xbf16>
    %cst = arith.constant dense<0.000000e+00> : vector<8x128xf32>
    %3 = tpu.matmul %1, %2, %cst {dimension_numbers = #tpu.dot_dimension_numbers<[1], [0], [0], [1], [0, 0, 1, 1], [], []>} : vector<8x768xbf16>, vector<768x128xbf16>, vector<8x128xf32> -> vector<8x128xf32>
    %c0_3 = arith.constant 0 : index
    %c0_4 = arith.constant 0 : index
    %4 = vector.load %arg3[%c0_3, %c0_4] : memref<1x128xf32, #tpu.memory_space<vmem>>, vector<1x128xf32>
    %5 = vector.broadcast %4 : vector<1x128xf32> to vector<8x128xf32>
    %6 = arith.addf %3, %5 : vector<8x128xf32>
    %cst_5 = arith.constant 0.000000e+00 : f32
    %7 = vector.broadcast %cst_5 : f32 to vector<8x128xf32>
    %8 = arith.maximumf %6, %7 : vector<8x128xf32>
    %c0_6 = arith.constant 0 : index
    %c0_7 = arith.constant 0 : index
    %9 = vector.load %arg4[%c0_6, %c0_7] : memref<128x8xf32, #tpu.memory_space<vmem>>, vector<128x8xf32>
    %cst_8 = arith.constant dense<0.000000e+00> : vector<8x8xf32>
    %10 = tpu.matmul %8, %9, %cst_8 {dimension_numbers = #tpu.dot_dimension_numbers<[1], [0], [0], [1], [0, 0, 1, 1], [], []>} : vector<8x128xf32>, vector<128x8xf32>, vector<8x8xf32> -> vector<8x8xf32>
    %c0_9 = arith.constant 0 : index
    %c0_10 = arith.constant 0 : index
    %11 = vector.load %arg5[%c0_9, %c0_10] : memref<1x8xf32, #tpu.memory_space<vmem>>, vector<1x8xf32>
    %12 = vector.broadcast %11 : vector<1x8xf32> to vector<8x8xf32>
    %13 = arith.addf %10, %12 : vector<8x8xf32>
    %14 = tpu.iota {dimensions = array<i32: 1>} : vector<8x8xi32>
    %c2_i32 = arith.constant 2 : i32
    %15 = vector.broadcast %c2_i32 : i32 to vector<8x8xi32>
    %16 = arith.cmpi slt, %14, %15 : vector<8x8xi32>
    %cst_11 = arith.constant 0xFF800000 : f32
    %17 = vector.broadcast %cst_11 : f32 to vector<8x8xf32>
    %18 = arith.select %16, %13, %17 : vector<8x8xi1>, vector<8x8xf32>
    %cst_12 = arith.constant dense<0xFF800000> : vector<8xf32>
    %19 = vector.multi_reduction <maximumf>, %18, %cst_12 [1] : vector<8x8xf32> to vector<8xf32>
    %20 = vector.shape_cast %19 : vector<8xf32> to vector<8x1xf32>
    %21 = vector.broadcast %20 : vector<8x1xf32> to vector<8x8xf32>
    %22 = arith.subf %13, %21 : vector<8x8xf32>
    %23 = math.exp %22 : vector<8x8xf32>
    %cst_13 = arith.constant 0.000000e+00 : f32
    %24 = vector.broadcast %cst_13 : f32 to vector<8x8xf32>
    %25 = arith.select %16, %23, %24 : vector<8x8xi1>, vector<8x8xf32>
    %cst_14 = arith.constant dense<0.000000e+00> : vector<8xf32>
    %26 = vector.multi_reduction <add>, %25, %cst_14 [1] : vector<8x8xf32> to vector<8xf32>
    %27 = vector.shape_cast %26 : vector<8xf32> to vector<8x1xf32>
    %28 = math.log %27 : vector<8x1xf32>
    %29 = vector.broadcast %28 : vector<8x1xf32> to vector<8x8xf32>
    %30 = arith.subf %22, %29 : vector<8x8xf32>
    %c0_15 = arith.constant 0 : index
    %c0_16 = arith.constant 0 : index
    %31 = vector.load %arg6[%c0_15, %c0_16] : memref<8x8xf32, #tpu.memory_space<vmem>>, vector<8x8xf32>
    tpu.vector_store %arg6[%c0_15, %c0_16], %30 {strides = array<i32>} : memref<8x8xf32, #tpu.memory_space<vmem>>, vector<8x8xf32>,
    return
  }
  func.func @transform_0(%arg0: i32) -> (i32, i32) {
    %c0_i32 = arith.constant 0 : i32
    %c0_i32_0 = arith.constant 0 : i32
    return %arg0, %c0_i32 : i32, i32
  }
  func.func @transform_1(%arg0: i32) -> (i32, i32) {
    %c0_i32 = arith.constant 0 : i32
    %c0_i32_0 = arith.constant 0 : i32
    %c0_i32_1 = arith.constant 0 : i32
    return %c0_i32, %c0_i32_0 : i32, i32
  }
  func.func @transform_2(%arg0: i32) -> (i32, i32) {
    %c0_i32 = arith.constant 0 : i32
    %c0_i32_0 = arith.constant 0 : i32
    %c0_i32_1 = arith.constant 0 : i32
    return %c0_i32, %c0_i32_0 : i32, i32
  }
  func.func @transform_3(%arg0: i32) -> (i32, i32) {
    %c0_i32 = arith.constant 0 : i32
    %c0_i32_0 = arith.constant 0 : i32
    %c0_i32_1 = arith.constant 0 : i32
    return %c0_i32, %c0_i32_0 : i32, i32
  }
  func.func @transform_4(%arg0: i32) -> (i32, i32) {
    %c0_i32 = arith.constant 0 : i32
    %c0_i32_0 = arith.constant 0 : i32
    %c0_i32_1 = arith.constant 0 : i32
    return %c0_i32, %c0_i32_0 : i32, i32
  }
  func.func @transform_5(%arg0: i32) -> (i32, i32) {
    %c0_i32 = arith.constant 0 : i32
    %c0_i32_0 = arith.constant 0 : i32
    return %arg0, %c0_i32 : i32, i32
  }
}

</mosaic_0001>

<bundles_post_ra>
// kernel: tpu_custom_call.1
= control target key start
LH: loop header
LB: loop body
LE: loop exit
PB: predicated region body
PF: predicated region fallthrough
CT: control target
= control target key end

     0   :  { %10 = vsyncpa [#allocation3], 0  ;;  %s1058_s0 = inlined_call_operand.vmem [shape: f32[2,768], index: 0, kind: input, shape index: {}]   ;;  %s1059_s1 = inlined_call_operand.hbm [shape: bf16[768,128], index: 1, kind: input, shape index: {}]   ;;  %s1060_s2 = inlined_call_operand.vmem [shape: f32[1,128], index: 2, kind: input, shape index: {}]   ;;  %s1061_s3 = inlined_call_operand.vmem [shape: f32[128,8], index: 3, kind: input, shape index: {}]   ;;  %s1062_s4 = inlined_call_operand.vmem [shape: f32[1,8], index: 4, kind: input, shape index: {}]   ;;  %s1063_s5 = inlined_call_operand.hbm [shape: f32[2,8], index: 5, kind: output, shape index: {}]  }
   0x1   :  { %11 = vsyncpa [#allocation4], 0  ;;  %s18_s20 = sshll.u32 %s1059_s1, 4  ;;  %s935_s21 = smov [#allocation2]   ;;  %s19_s20 = int_to_ptr.hbm [resolvable:$true] %s18_s20 }
   0x2   :  { %s20_s22 = sshll.u32 %s935_s21, 4  ;;  %s936_s23 = smov 64   ;;  %s21_s22 = int_to_ptr.vmem [resolvable:$true] %s20_s22 }
   0x3   :  { %s937_s24 = smov 4  }
   0x4   :  { %26 = dma.hbm_to_vmem [thread:$0]  %s19_s20, 6144, %s21_s22, [#allocation3], %s936_s23, %s936_s23, %s937_s24  }
   0x5   :  { %931 = dma.done.wait [#allocation3], 6144  }
   0x6   :  { %932 = vsyncadd [#allocation3], 4294961152  ;;  %v830_v0 = vld [vmem:[#allocation2 + $0x38] sm:$0xff]  ;;  %v829_v2 = vld [vmem:[#allocation2 + $0x30] sm:$0xff]  ;;  %vm597_vm1 = vcmask 64512  }
   0x7   :  { %v838_v1 = vld [vmem:[#allocation2 + $0x78] sm:$0xff]  ;;  %474 = vmatpush.bf16.msra.mxu0 %v830_v0  ;;  %v837_v3 = vld [vmem:[#allocation2 + $0x70] sm:$0xff]  ;;  %v828_v8 = vld [vmem:[#allocation2 + $0x28] sm:$0xff] }
   0x8   :  { %487 = vmatpush.bf16.msra.mxu1 %v838_v1  ;;  %v846_v4 = vld [vmem:[#allocation2 + $0xb8] sm:$0xff]  ;;  %v845_v6 = vld [vmem:[#allocation2 + $0xb0] sm:$0xff]  ;;  %v836_v9 = vld [vmem:[#allocation2 + $0x68] sm:$0xff] }
   0x9   :  { %v854_v5 = vld [vmem:[#allocation2 + $0xf8] sm:$0xff]  ;;  %500 = vmatpush.bf16.msra.mxu2 %v846_v4  ;;  %v853_v7 = vld [vmem:[#allocation2 + $0xf0] sm:$0xff]  ;;  %v844_v10 = vld [vmem:[#allocation2 + $0xa8] sm:$0xff] }
   0xa   :  { %513 = vmatpush.bf16.msra.mxu3 %v854_v5  ;;  %v852_v11 = vld [vmem:[#allocation2 + $0xe8] sm:$0xff]  ;;  %v827_v12 = vld [vmem:[#allocation2 + $0x20] sm:$0xff]  ;;  %v37_v14 = vld [vmem:[%s1058_s0] sm:$0xff] }
   0xb   :  { %475 = vmatpush.bf16.msra.mxu0 %v829_v2  ;;  %v835_v13 = vld [vmem:[#allocation2 + $0x60] sm:$0xff]  ;;  %v41_v16 = vld [vmem:[%s1058_s0 + $0x18] sm:$0xff]  ;;  %53 = vst [vmem:[#allocation1] ss:$4 sm:$0xff] %v37_v14  ;;  %v826_v20 = vld [vmem:[#allocation2 + $0x18] sm:$0xff] }
   0xc   :  { %488 = vmatpush.bf16.msra.mxu1 %v837_v3  ;;  %v39_v15 = vld [vmem:[%s1058_s0 + $0xc] sm:$0xff]  ;;  %v43_v18 = vld [vmem:[%s1058_s0 + $0x24] sm:$0xff]  ;;  %57 = vst [vmem:[#allocation1 + $0x2] ss:$4 sm:$0xff] %v41_v16  ;;  %v825_v24 = vld [vmem:[#allocation2 + $0x10] sm:$0xff] }
   0xd   :  { %501 = vmatpush.bf16.msra.mxu2 %v845_v6  ;;  %v843_v17 = vld [vmem:[#allocation2 + $0xa0] sm:$0xff]  ;;  %55 = vst [vmem:[#allocation1 + $0x1] ss:$4 sm:$0xff] %v39_v15  ;;  %v834_v21 = vld [vmem:[#allocation2 + $0x58] sm:$0xff]  ;;  %v833_v25 = vld [vmem:[#allocation2 + $0x50] sm:$0xff] }
   0xe   :  { %514 = vmatpush.bf16.msra.mxu3 %v853_v7  ;;  %v851_v19 = vld [vmem:[#allocation2 + $0xe0] sm:$0xff]  ;;  %59 = vst [vmem:[#allocation1 + $0x3] ss:$4 sm:$0xff] %v43_v18  ;;  %v842_v22 = vld [vmem:[#allocation2 + $0x98] sm:$0xff]  ;;  %v40_v27 = vld [vmem:[%s1058_s0 + $0x14] sm:$0xf] }
   0xf   :  { %476 = vmatpush.bf16.msra.mxu0 %v828_v8  ;;  %v850_v23 = vld [vmem:[#allocation2 + $0xd8] sm:$0xff]  ;;  %v38_v26 = vld [vmem:[%s1058_s0 + $0x8] sm:$0xf]  ;;  %v841_v28 = vld [vmem:[#allocation2 + $0x90] sm:$0xff]  ;;  %63 = vst [vmem:[#allocation1 + $0x21] ss:$4 sm:$0xff] %v40_v27 }
  0x10   :  { %489 = vmatpush.bf16.msra.mxu1 %v836_v9  ;;  %61 = vst [vmem:[#allocation1 + $0x20] ss:$4 sm:$0xff] %v38_v26  ;;  %v849_v29 = vld [vmem:[#allocation2 + $0xd0] sm:$0xff]  ;;  %v42_v30 = vld [vmem:[%s1058_s0 + $0x20] sm:$0xf]  ;;  %v824_v31 = vld [vmem:[#allocation2 + $0x8] sm:$0xff] }
  0x11   :  { %502 = vmatpush.bf16.msra.mxu2 %v844_v10  ;;  %v832_v32 = vld [vmem:[#allocation2 + $0x48] sm:$0xff]  ;;  %v44_v33 = vld [vmem:[%s1058_s0 + $0x2c] sm:$0xf]  ;;  %65 = vst [vmem:[#allocation1 + $0x22] ss:$4 sm:$0xff] %v42_v30  ;;  %v862_v40 = vld [vmem:[#allocation2 + $0x138] sm:$0xff] }
  0x12   :  { %515 = vmatpush.bf16.msra.mxu3 %v852_v11  ;;  %v840_v34 = vld [vmem:[#allocation2 + $0x88] sm:$0xff]  ;;  %v823_v35 = vld [vmem:[#allocation2] sm:$0xff]  ;;  %67 = vst [vmem:[#allocation1 + $0x23] ss:$4 sm:$0xff] %v44_v33  ;;  %v870_v41 = vld [vmem:[#allocation2 + $0x178] sm:$0xff] }
  0x13   :  { %477 = vmatpush.bf16.msra.mxu0 %v827_v12  ;;  %v831_v36 = vld [vmem:[#allocation2 + $0x40] sm:$0xff]  ;;  %v848_v37 = vld [vmem:[#allocation2 + $0xc8] sm:$0xff]  ;;  %v861_v48 = vld [vmem:[#allocation2 + $0x130] sm:$0xff] }
  0x14   :  { %490 = vmatpush.bf16.msra.mxu1 %v835_v13  ;;  %v839_v42 = vld [vmem:[#allocation2 + $0x80] sm:$0xff]  ;;  %v869_v49 = vld [vmem:[#allocation2 + $0x170] sm:$0xff]  ;;  %v860_v52 = vld [vmem:[#allocation2 + $0x128] sm:$0xff] }
  0x15   :  { %503 = vmatpush.bf16.msra.mxu2 %v843_v17  ;;  %v68_v38 = vld.sshfl [vmem:[#allocation1] sm:$0xff pattern:$0x73625140]  ;;  %v69_v39 = vld.sshfl [vmem:[#allocation1 + $0x8] sm:$0xff pattern:$0x73625140] }
  0x16   :  { %516 = vmatpush.bf16.msra.mxu3 %v851_v19  ;;  %v80_v43 = vpack.c.bf16 %v68_v38, %v68_v38  ;;  %v81_v44 = vpack.c.bf16 %v69_v39, %v69_v39  ;;  %v70_v45 = vld.sshfl [vmem:[#allocation1 + $0x10] sm:$0xff pattern:$0x73625140]  ;;  %v847_v46 = vld [vmem:[#allocation2 + $0xc0] sm:$0xff]  ;;  %v858_v56 = vld [vmem:[#allocation2 + $0x118] sm:$0xff] }
  0x17   :  { %478 = vmatpush.bf16.msra.mxu0 %v826_v20  ;;  %v71_v47 = vld.sshfl [vmem:[#allocation1 + $0x18] sm:$0xff pattern:$0x73625140]  ;;  %v82_v50 = vpack.c.bf16 %v70_v45, %v70_v45  ;;  %v868_v53 = vld [vmem:[#allocation2 + $0x168] sm:$0xff]  ;;  %v859_v54 = vld [vmem:[#allocation2 + $0x120] sm:$0xff] }
  0x18   :  { %491 = vmatpush.bf16.msra.mxu1 %v834_v21  ;;  %v83_v51 = vpack.c.bf16 %v71_v47, %v71_v47  ;;  %v867_v55 = vld [vmem:[#allocation2 + $0x160] sm:$0xff]  ;;  %v866_v57 = vld [vmem:[#allocation2 + $0x158] sm:$0xff]  ;;  %v857_v58 = vld [vmem:[#allocation2 + $0x110] sm:$0xff] }
  0x19   :  { %504 = vmatpush.bf16.msra.mxu2 %v842_v22  ;;  %v865_v59 = vld [vmem:[#allocation2 + $0x150] sm:$0xff]  ;;  %v856_v60 = vld [vmem:[#allocation2 + $0x108] sm:$0xff]  ;;  %v855_v62 = vld [vmem:[#allocation2 + $0x100] sm:$0xff] }
  0x1a   :  { %517 = vmatpush.bf16.msra.mxu3 %v850_v23  ;;  %v864_v61 = vld [vmem:[#allocation2 + $0x148] sm:$0xff]  ;;  %v863_v63 = vld [vmem:[#allocation2 + $0x140] sm:$0xff]  ;;  %v72_v0 = vld.sshfl [vmem:[#allocation1 + $0x20] sm:$0xff pattern:$0x73625140] }
  0x1b   :  { %479 = vmatpush.bf16.msra.mxu0 %v825_v24  ;;  %v73_v1 = vld.sshfl [vmem:[#allocation1 + $0x28] sm:$0xff pattern:$0x73625140]  ;;  %v84_v2 = vpack.c.bf16 %v72_v0, %v72_v0  ;;  %v568_v4 = vld [vmem:[%s1061_s3 + $0x78] sm:$0xff]  ;;  %v567_v5 = vld [vmem:[%s1061_s3 + $0x70] sm:$0xff] }
  0x1c   :  { %492 = vmatpush.bf16.msra.mxu1 %v833_v25  ;;  %v85_v3 = vpack.c.bf16 %v73_v1, %v73_v1  ;;  %v566_v6 = vld [vmem:[%s1061_s3 + $0x68] sm:$0xff]  ;;  %v565_v7 = vld [vmem:[%s1061_s3 + $0x60] sm:$0xff]  ;;  %v564_v8 = vld [vmem:[%s1061_s3 + $0x58] sm:$0xff] }
  0x1d   :  { %505 = vmatpush.bf16.msra.mxu2 %v841_v28  ;;  %v563_v9 = vld [vmem:[%s1061_s3 + $0x50] sm:$0xff]  ;;  %v562_v10 = vld [vmem:[%s1061_s3 + $0x48] sm:$0xff]  ;;  %v561_v11 = vld [vmem:[%s1061_s3 + $0x40] sm:$0xff] }
  0x1e   :  { %518 = vmatpush.bf16.msra.mxu3 %v849_v29  ;;  %v560_v12 = vld [vmem:[%s1061_s3 + $0x38] sm:$0xff]  ;;  %v559_v13 = vld [vmem:[%s1061_s3 + $0x30] sm:$0xff]  ;;  %v558_v14 = vld [vmem:[%s1061_s3 + $0x28] sm:$0xff] }
  0x1f   :  { %480 = vmatpush.bf16.msra.mxu0 %v824_v31  ;;  %v557_v15 = vld [vmem:[%s1061_s3 + $0x20] sm:$0xff]  ;;  %v556_v16 = vld [vmem:[%s1061_s3 + $0x18] sm:$0xff]  ;;  %v555_v17 = vld [vmem:[%s1061_s3 + $0x10] sm:$0xff] }
  0x20   :  { %493 = vmatpush.bf16.msra.mxu1 %v832_v32  ;;  %v554_v20 = vld [vmem:[%s1061_s3 + $0x8] sm:$0xff]  ;;  %v553_v21 = vld [vmem:[%s1061_s3] sm:$0xff] }
  0x21   :  { %506 = vmatpush.bf16.msra.mxu2 %v840_v34  ;;  %v877_v26 = vld [vmem:[%s1060_s2] ss:$0 sm:$0xff] }
  0x22   :  { %519 = vmatpush.bf16.msra.mxu3 %v848_v37 }
  0x23   :  { %481 = vmatpush.bf16.msra.mxu0 %v823_v35 }
  0x24   :  { %494 = vmatpush.bf16.msra.mxu1 %v831_v36 }
  0x25   :  { %507 = vmatpush.bf16.msra.mxu2 %v839_v42  ;;  %v878_v42 = vld [vmem:[%s1062_s4] ss:$0 sm:$0xff] }
  0x26   :  { %482 = vmatmul.bf16.vlgmr.msra.gmra.mxu0 %v80_v43  ;;  %520 = vmatpush.bf16.msra.mxu3 %v847_v46 }
  0x27   :  { %526 = vmatpush.bf16.msrb.mxu0 %v862_v40  ;;  %495 = vmatmul.bf16.vlgmr.msra.gmra.mxu1 %v81_v44  ;;  %v593_v40 = vlaneseq }
  0x28   :  { %539 = vmatpush.bf16.msrb.mxu1 %v870_v41  ;;  %508 = vmatmul.bf16.vlgmr.msra.gmra.mxu2 %v82_v50 }
  0x29   :  { %521 = vmatmul.bf16.vlgmr.msra.gmra.mxu3 %v83_v51  ;;  %573 = vmatpush.msrb.mxu2 %v568_v4  ;;  %v594_v41 = vand.u32 127, %v593_v40 }
  0x2b   :  { %527 = vmatpush.bf16.msrb.mxu0 %v861_v48  ;;  %574 = vmatpush.msrb.mxu2 %v567_v5  ;;  %vm595_vm0 = vcmp.lt.s32.totalorder %v594_v41, 2 }
  0x2c   :  { %540 = vmatpush.bf16.msrb.mxu1 %v869_v49 }
  0x2d   :  { %575 = vmatpush.msrb.mxu2 %v566_v6 }
  0x2f   :  { %528 = vmatpush.bf16.msrb.mxu0 %v860_v52  ;;  %576 = vmatpush.msrb.mxu2 %v565_v7 }
  0x30   :  { %541 = vmatpush.bf16.msrb.mxu1 %v868_v53 }
  0x31   :  { %577 = vmatpush.msrb.mxu2 %v564_v8 }
  0x33   :  { %529 = vmatpush.bf16.msrb.mxu0 %v859_v54  ;;  %578 = vmatpush.msrb.mxu2 %v563_v9 }
  0x34   :  { %542 = vmatpush.bf16.msrb.mxu1 %v867_v55 }
  0x35   :  { %579 = vmatpush.msrb.mxu2 %v562_v10 }
  0x37   :  { %530 = vmatpush.bf16.msrb.mxu0 %v858_v56  ;;  %580 = vmatpush.msrb.mxu2 %v561_v11 }
  0x38   :  { %543 = vmatpush.bf16.msrb.mxu1 %v866_v57 }
  0x39   :  { %581 = vmatpush.msrb.mxu2 %v560_v12 }
  0x3b   :  { %531 = vmatpush.bf16.msrb.mxu0 %v857_v58  ;;  %582 = vmatpush.msrb.mxu2 %v559_v13 }
  0x3c   :  { %544 = vmatpush.bf16.msrb.mxu1 %v865_v59 }
  0x3d   :  { %583 = vmatpush.msrb.mxu2 %v558_v14 }
  0x3f   :  { %532 = vmatpush.bf16.msrb.mxu0 %v856_v60  ;;  %584 = vmatpush.msrb.mxu2 %v557_v15 }
  0x40   :  { %545 = vmatpush.bf16.msrb.mxu1 %v864_v61 }
  0x41   :  { %585 = vmatpush.msrb.mxu2 %v556_v16 }
  0x43   :  { %533 = vmatpush.bf16.msrb.mxu0 %v855_v62  ;;  %586 = vmatpush.msrb.mxu2 %v555_v17 }
  0x44   :  { %546 = vmatpush.bf16.msrb.mxu1 %v863_v63 }
  0x45   :  { %587 = vmatpush.msrb.mxu2 %v554_v20 }
  0x46   :  { %534 = vmatmul.bf16.vlgmr.msrb.gmra.mxu0 %v84_v2 }
  0x47   :  { %547 = vmatmul.bf16.vlgmr.msrb.gmra.mxu1 %v85_v3  ;;  %588 = vmatpush.msrb.mxu2 %v553_v21 }
  0xa3   :  { %v483_v18 = vpop.f32.mrf.mxu0 }
  0xa4   :  { %v496_v19 = vpop.f32.mrf.mxu1  ;;  %v484_v27 = vadd.f32 %v877_v26, %v483_v18 }
  0xa6   :  { %v497_v30 = vadd.f32 %v496_v19, %v484_v27 }
  0xab   :  { %v485_v22 = vpop.f32.mrf.mxu0  ;;  %v509_v24 = vpop.f32.mrf.mxu2 }
  0xac   :  { %v498_v23 = vpop.f32.mrf.mxu1  ;;  %v522_v25 = vpop.f32.mrf.mxu3  ;;  %v510_v31 = vadd.f32 %v509_v24, %v497_v30 }
  0xae   :  { %v523_v32 = vadd.f32 %v522_v25, %v510_v31 }
  0xb3   :  { %v511_v28 = vpop.f32.mrf.mxu2 }
  0xb4   :  { %v524_v29 = vpop.f32.mrf.mxu3 }
  0xc3   :  { %v535_v33 = vpop.f32.mrf.mxu0 }
  0xc4   :  { %v548_v34 = vpop.f32.mrf.mxu1  ;;  %v536_v35 = vadd.f32 %v535_v33, %v523_v32 }
  0xc6   :  { %v549_v36 = vadd.f32 %v548_v34, %v536_v35 }
  0xc8   :  { %v552_v37 = vmax.f32 %v549_v36, 0.0 }
  0xca   :  { %589 = vmatmul.f32.vlgmr.msrb.gmra.mxu2 %v552_v37 }
  0xcb   :  { %v537_v38 = vpop.f32.mrf.mxu0 }
  0xcc   :  { %v550_v39 = vpop.f32.mrf.mxu1 }
 0x14d   :  { %v590_v43 = vpop.f32.mrf.mxu2 }
 0x14e   :  { %v591_v44 = vadd.f32 %v878_v42, %v590_v43 }
 0x150   :  { %v596_v45 = vsel %vm595_vm0, %v591_v44, -inf }
 0x151   :  { %v598_v46 = vsel %vm597_vm1, %v596_v45, -inf }
 0x152   :  { %599 = vmax.xlane.f32.xlu0 %v598_v46 }
 0x1c5   :  { %v600_v47 = vpop.xlane.xlu0 %599 }
 0x1c6   :  { %v601_v48 = vsub.f32 %v591_v44, %v600_v47 }
 0x1c8   :  { %v602_v49 = vmul.f32 1.442695, %v601_v48 }
 0x1ca   :  { %879 = vpow2.f32 %v602_v49 }
 0x1d0   :  { %v880_v50 = vpop.eup %879 }
 0x1d1   :  { %v604_v51 = vsel %vm595_vm0, %v880_v50, 0.0 }
 0x1d2   :  { %v605_v52 = vsel %vm597_vm1, %v604_v51, 0.0 }
 0x1d3   :  { %606 = vadd.xlane.f32.xlu0 %v605_v52 }
 0x246   :  { %v607_v53 = vpop.xlane.xlu0 %606 }
 0x247   :  { %881 = vlog2.f32 %v607_v53 }
 0x24d   :  { %v882_v54 = vpop.eup %881 }
 0x24e   :  { %v609_v55 = vmul.f32 0.6931472, %v882_v54 }
 0x250   :  { %v610_v56 = vsub.f32 %v601_v48, %v609_v55 }
 0x252   :  { %611 = vst.msk [vmem:[#allocation5] sm:$0xff] %vm597_vm1, %v610_v56 }
 0x253   :  { %615 = vsyncadd [#allocation4], 96  ;;  %s618_s22 = sshll.u32 %s1063_s5, 4  ;;  %s938_s23 = smov [#allocation5]   ;;  %s619_s22 = int_to_ptr.hbm [resolvable:$true] %s618_s22 }
 0x254   :  { %s616_s24 = sshll.u32 %s938_s23, 4  ;;  %s939_s1 = smov 32   ;;  %s617_s24 = int_to_ptr.vmem [resolvable:$true] %s616_s24 }
 0x255   :  { %s940_s25 = smov 2  }
 0x256   :  { %624 = dma.vmem_to_hbm [thread:$0]  %s617_s24, 32, %s619_s22, [#allocation4], %s939_s1, %s939_s1, %s940_s25  }
 0x257   :  { %933 = dma.done.wait [#allocation4], 128  }
 0x258   :  { %934 = vsyncadd [#allocation4], 4294967168 }
 0x259   :  { %629 = vsyncpa [#allocation3], 1 }
 0x25a   :  { %630 = vsyncpa [#allocation4], 1 }

</bundles_post_ra>
